<compile_context>
chip_gen: v6e
topology: v6e:2x2x1
jax: 0.10.0
libtpu: 0.0.40
codegen_flags: <defaults>
</compile_context>

<pallas_src>
import jax
import jax.numpy as jnp
from jax.experimental import pallas as pl
from jax.experimental.pallas import tpu as pltpu

LN_EPS = 1e-5  # PyTorch nn.LayerNorm default eps


def _round_up(x, m):
    return (x + m - 1) // m * m


def _sublane_multiple(dtype):
    bits = jnp.dtype(dtype).itemsize * 8
    return max(8, 256 // bits)  # 8 (f32), 16 (bf16), 32 (int8)


def _default_vmem_limit():
    try:
        cap = pltpu.get_tpu_info().vmem_capacity_bytes
    except Exception:
        cap = 64 * 1024 * 1024  # conservative fallback (v7x per-TC VMEM)
    return min(int(cap * 0.75), 100 * 1024 * 1024)


def _layernorm(x, gamma, beta):
    mu = jnp.mean(x, axis=-1, keepdims=True)
    var = jnp.mean((x - mu) * (x - mu), axis=-1, keepdims=True)  # biased var, like torch LN
    return (x - mu) * jax.lax.rsqrt(var + LN_EPS) * gamma + beta


def _make_kernel(n_cols, tk, ragged_k, mm_dtype):
    def kernel(eps_ref, a_ref, vk_ref, vr_ref, w1_ref, b1_ref, g1_ref, be1_ref,
               w2_ref, b2_ref, g2_ref, be2_ref, o_ref, acc_ref):
        k = pl.program_id(2)

        @pl.when(k == 0)
        def _():
            acc_ref[...] = jnp.zeros_like(acc_ref)

        a_blk = a_ref[...]
        v_blk = vk_ref[...]
        if ragged_k:
            # Last K tile runs past N: zero BOTH factors so garbage columns/rows (possibly
            # NaN stale VMEM) cannot contaminate valid accumulator rows.
            valid = n_cols - k * tk           # >= tk for all but the last K tile
            col = jax.lax.broadcasted_iota(jnp.int32, a_blk.shape, 1)
            row = jax.lax.broadcasted_iota(jnp.int32, v_blk.shape, 0)
            a_blk = jnp.where(col < valid, a_blk, jnp.zeros_like(a_blk))
            v_blk = jnp.where(row < valid, v_blk, jnp.zeros_like(v_blk))

        # Partial a @ v on the MXU; f32 accumulation in VMEM scratch.
        acc_ref[...] += jnp.dot(a_blk.astype(mm_dtype), v_blk.astype(mm_dtype),
                                preferred_element_type=jnp.float32)

        @pl.when(k == pl.num_programs(2) - 1)
        def _():
            eps = eps_ref[0, 0]                                   # scalar from SMEM
            agg = acc_ref[...] + eps * vr_ref[...].astype(jnp.float32)

            # Linear(n_region -> hidden) -> LayerNorm -> ReLU
            h = jnp.dot(agg, w1_ref[...], preferred_element_type=jnp.float32) + b1_ref[...]
            h = jnp.maximum(_layernorm(h, g1_ref[...], be1_ref[...]), 0.0)

            # Linear(hidden -> output) -> LayerNorm -> ReLU
            h2 = jnp.dot(h, w2_ref[...], preferred_element_type=jnp.float32) + b2_ref[...]
            h2 = jnp.maximum(_layernorm(h2, g2_ref[...], be2_ref[...]), 0.0)
            o_ref[...] = h2.astype(o_ref.dtype)

    return kernel


def layer_gin(v, a, params, *, block_rows=512, block_cols=None,
              vmem_limit_bytes=None, out_dtype=jnp.float32):
    """LayerGIN forward: relu(LN(lin2(relu(LN(lin1(a @ v + eps * v)))))).

    Accepts single graph (N, D)/(N, N) or batched (B, N, D)/(B, N, N). `a` is streamed in
    the dtype it is stored in (store it bf16 upstream for ~2x HBM-bandwidth win); no cast or
    pad passes over the N^2 array are performed in the wrapper.
    """
    squeeze = (v.ndim == 2)
    if squeeze:
        v, a = v[None], a[None]

    B, N, D = v.shape
    out_dim = params["w2"].shape[1]

    if vmem_limit_bytes is None:
        vmem_limit_bytes = _default_vmem_limit()

    a_bytes = jnp.dtype(a.dtype).itemsize
    sub = max(_sublane_multiple(a.dtype), _sublane_multiple(v.dtype))
    mm_dtype = jnp.float32 if a.dtype == jnp.float32 else jnp.bfloat16

    # Row tile: multiple of the dtype's sublane packing, no larger than (rounded-up) N.
    tm = max(sub, min(_round_up(block_rows, sub), _round_up(N, sub)))

    # K tile over the a @ v contraction: full N when the double-buffered a tile fits the VMEM
    # budget, otherwise a multiple of 128 sized so 2 * tm * tk * bytes stays inside it.
    a_budget = vmem_limit_bytes // 2
    if block_cols is not None:
        tk = block_cols
    elif 2 * tm * N * a_bytes <= a_budget:
        tk = N
    else:
        tk = max(128, (a_budget // (2 * tm * a_bytes)) // 128 * 128)
        while tm > sub and 2 * tm * tk * a_bytes > a_budget:
            tm = max(sub, ((tm // 2) // sub) * sub)
    if tk >= N:
        tk = N
    else:
        tk = max(128, (tk // 128) * 128)   # K blocks must be 128-lane aligned

    n_row_tiles = pl.cdiv(N, tm)
    n_k_tiles = pl.cdiv(N, tk)
    ragged_k = (N % tk) != 0
    grid = (B, n_row_tiles, n_k_tiles)

    def resident(arr):  # full-array block pinned in VMEM across the whole grid
        nd = arr.ndim
        return pl.BlockSpec(arr.shape, lambda b, i, k, _nd=nd: (0,) * _nd)

    in_specs = [
        # eps: single scalar on the SMEM/sreg path (no VMEM tile, no vreg broadcast DMA).
        pl.BlockSpec(memory_space=pltpu.MemorySpace.SMEM),
        # a: (row, K)-tiled, double-buffered -- the dominant HBM stream.
        pl.BlockSpec((None, tm, tk), lambda b, i, k: (b, i, k)),
        # v, K-tiled view for the matmul (fully resident per graph when tk == N).
        pl.BlockSpec((None, tk, D), lambda b, i, k: (b, k, 0)),
        # v, row-tiled view for the eps-skip (avoids dynamic slicing in-kernel).
        pl.BlockSpec((None, tm, D), lambda b, i, k: (b, i, 0)),
        resident(params["w1"]), resident(params["b1"]),
        resident(params["g1"]), resident(params["be1"]),
        resident(params["w2"]), resident(params["b2"]),
        resident(params["g2"]), resident(params["be2"]),
    ]
    out_spec = pl.BlockSpec((None, tm, out_dim), lambda b, i, k: (b, i, 0))

    out = pl.pallas_call(
        _make_kernel(N, tk, ragged_k, mm_dtype),
        grid=grid,
        in_specs=in_specs,
        out_specs=out_spec,
        out_shape=jax.ShapeDtypeStruct((B, N, out_dim), out_dtype),
        scratch_shapes=[pltpu.VMEM((tm, D), jnp.float32)],
        compiler_params=pltpu.CompilerParams(
            dimension_semantics=("parallel", "parallel", "arbitrary"),
            vmem_limit_bytes=vmem_limit_bytes,
        ),
    )(params["eps"], a, v, v,
      params["w1"], params["b1"], params["g1"], params["be1"],
      params["w2"], params["b2"], params["g2"], params["be2"])

    return out[0] if squeeze else out


def layer_gin_ref(v, a, p):
    """Pure-JAX reference mirroring the kernel's numeric path (narrow `a` upcast exactly)."""
    mm_dtype = jnp.float32 if a.dtype == jnp.float32 else jnp.bfloat16
    hp = jax.lax.Precision.HIGHEST

    def single(v1, a1):
        a_mm = a1.astype(mm_dtype).astype(jnp.float32)
        v_mm = v1.astype(mm_dtype).astype(jnp.float32)
        agg = jnp.dot(a_mm, v_mm, precision=hp) + p["eps"][0, 0] * v1
        h = jnp.dot(agg, p["w1"], precision=hp) + p["b1"]
        mu = h.mean(-1, keepdims=True)
        var = ((h - mu) ** 2).mean(-1, keepdims=True)
        h = jnp.maximum((h - mu) / jnp.sqrt(var + LN_EPS) * p["g1"] + p["be1"], 0.0)
        h2 = jnp.dot(h, p["w2"], precision=hp) + p["b2"]
        mu2 = h2.mean(-1, keepdims=True)
        var2 = ((h2 - mu2) ** 2).mean(-1, keepdims=True)
        return jnp.maximum((h2 - mu2) / jnp.sqrt(var2 + LN_EPS) * p["g2"] + p["be2"], 0.0)

    return single(v, a) if v.ndim == 2 else jax.vmap(single)(v, a)


if __name__ == "__main__":
    # Small shapes consistent with LayerGIN(n_region, hidden_dim, output_dim)
    n_region, hidden_dim, output_dim = 16, 32, 32

    key = jax.random.PRNGKey(0)
    kv1, ka1, kv2, ka2, kv3, ka3, kw1, kb1, kw2, kb2 = jax.random.split(key, 10)

    params = {
        "eps": jnp.full((1, 1), 0.5, jnp.float32),                                   # nn.Parameter [[eps]]
        "w1": jax.random.normal(kw1, (n_region, hidden_dim), jnp.float32) * 0.1,     # Linear w (transposed)
        "b1": jax.random.normal(kb1, (1, hidden_dim), jnp.float32) * 0.1,
        "g1": jnp.ones((1, hidden_dim), jnp.float32),                                # LayerNorm(hidden)
        "be1": jnp.zeros((1, hidden_dim), jnp.float32),
        "w2": jax.random.normal(kw2, (hidden_dim, output_dim), jnp.float32) * 0.1,
        "b2": jax.random.normal(kb2, (1, output_dim), jnp.float32) * 0.1,
        "g2": jnp.ones((1, output_dim), jnp.float32),                                # LayerNorm(output)
        "be2": jnp.zeros((1, output_dim), jnp.float32),
    }

    # Test 1: single graph, f32 adjacency, N == n_region (single tile per axis). Exact path.
    N1 = n_region
    v1 = jax.random.normal(kv1, (N1, n_region), jnp.float32)
    a1 = jax.random.uniform(ka1, (N1, N1), jnp.float32)
    out1 = layer_gin(v1, a1, params)
    jax.block_until_ready(out1)
    ref1 = layer_gin_ref(v1, a1, params)
    assert out1.shape == (N1, output_dim)
    assert jnp.allclose(out1, ref1, atol=1e-4, rtol=1e-4), "mismatch vs reference (test 1)"

    # Test 2: batched, bf16 adjacency stored narrow UPSTREAM (the default fast path: no wrapper
    # cast/pad passes), N not a multiple of the row tile -> ragged row tiles via OOB-block drop.
    B, N2 = 2, 40
    v2 = jax.random.normal(kv2, (B, N2, n_region), jnp.float32)
    a2 = jax.random.uniform(ka2, (B, N2, N2), jnp.float32).astype(jnp.bfloat16)
    out2 = layer_gin(v2, a2, params, block_rows=16)
    jax.block_until_ready(out2)
    ref2 = layer_gin_ref(v2, a2, params)
    assert out2.shape == (B, N2, output_dim)
    assert jnp.allclose(out2, ref2, atol=1e-3, rtol=1e-3), "mismatch vs reference (test 2)"

    # Test 3: K-tiled contraction with a ragged last K tile (the large-N / v7x VMEM-bounded
    # path), forced at a small shape via block_cols=128.
    N3 = 272
    v3 = jax.random.normal(kv3, (N3, n_region), jnp.float32)
    a3 = jax.random.uniform(ka3, (N3, N3), jnp.float32)
    out3 = layer_gin(v3, a3, params, block_rows=128, block_cols=128)
    jax.block_until_ready(out3)
    ref3 = layer_gin_ref(v3, a3, params)
    assert out3.shape == (N3, output_dim)
    assert jnp.allclose(out3, ref3, atol=1e-4, rtol=1e-4), "mismatch vs reference (test 3)"

    print("KERNEL_OK")
</pallas_src>

<mosaic_0001>
module attributes {stable_mosaic.version = 11 : i64} {
  func.func @kernel(%arg0: i32, %arg1: i32, %arg2: i32, %arg3: memref<1x1xf32, #tpu.memory_space<smem>>, %arg4: memref<1x16x16xf32, #tpu.memory_space<vmem>>, %arg5: memref<1x16x16xf32, #tpu.memory_space<vmem>>, %arg6: memref<1x16x16xf32, #tpu.memory_space<vmem>>, %arg7: memref<16x32xf32, #tpu.memory_space<vmem>>, %arg8: memref<1x32xf32, #tpu.memory_space<vmem>>, %arg9: memref<1x32xf32, #tpu.memory_space<vmem>>, %arg10: memref<1x32xf32, #tpu.memory_space<vmem>>, %arg11: memref<32x32xf32, #tpu.memory_space<vmem>>, %arg12: memref<1x32xf32, #tpu.memory_space<vmem>>, %arg13: memref<1x32xf32, #tpu.memory_space<vmem>>, %arg14: memref<1x32xf32, #tpu.memory_space<vmem>>, %arg15: memref<1x16x32xf32, #tpu.memory_space<vmem>>, %arg16: memref<16x16xf32, #tpu.memory_space<vmem>>) attributes {dimension_semantics = [#tpu.dimension_semantics<parallel>, #tpu.dimension_semantics<parallel>, #tpu.dimension_semantics<arbitrary>], iteration_bounds = array<i64: 1, 1, 1>, scalar_prefetch = 0 : i64, scratch_operands = 1 : i64, tpu.core_type = #tpu.core_type<tc>, window_params = [{transform_indices = @transform_0, window_bounds = array<i64: 1, 1>}, {transform_indices = @transform_1, window_bounds = array<i64: 1, 16, 16>}, {transform_indices = @transform_2, window_bounds = array<i64: 1, 16, 16>}, {transform_indices = @transform_3, window_bounds = array<i64: 1, 16, 16>}, {pipeline_mode = #tpu.pipeline_mode<synchronous>, transform_indices = @transform_4, window_bounds = array<i64: 16, 32>}, {pipeline_mode = #tpu.pipeline_mode<synchronous>, transform_indices = @transform_5, window_bounds = array<i64: 1, 32>}, {pipeline_mode = #tpu.pipeline_mode<synchronous>, transform_indices = @transform_6, window_bounds = array<i64: 1, 32>}, {pipeline_mode = #tpu.pipeline_mode<synchronous>, transform_indices = @transform_7, window_bounds = array<i64: 1, 32>}, {pipeline_mode = #tpu.pipeline_mode<synchronous>, transform_indices = @transform_8, window_bounds = array<i64: 32, 32>}, {pipeline_mode = #tpu.pipeline_mode<synchronous>, transform_indices = @transform_9, window_bounds = array<i64: 1, 32>}, {pipeline_mode = #tpu.pipeline_mode<synchronous>, transform_indices = @transform_10, window_bounds = array<i64: 1, 32>}, {pipeline_mode = #tpu.pipeline_mode<synchronous>, transform_indices = @transform_11, window_bounds = array<i64: 1, 32>}, {transform_indices = @transform_12, window_bounds = array<i64: 1, 16, 32>}]} {
    %c0_i32 = arith.constant 0 : i32
    %0 = arith.cmpi eq, %arg2, %c0_i32 : i32
    %1 = arith.extui %0 : i1 to i32
    %c0_i32_0 = arith.constant 0 : i32
    %2 = arith.cmpi ne, %1, %c0_i32_0 : i32
    scf.if %2 {
      %cst_12 = arith.constant 0.000000e+00 : f32
      %14 = vector.broadcast %cst_12 : f32 to vector<16x16xf32>
      %c0_13 = arith.constant 0 : index
      %c0_14 = arith.constant 0 : index
      %15 = vector.load %arg16[%c0_13, %c0_14] : memref<16x16xf32, #tpu.memory_space<vmem>>, vector<16x16xf32>
      tpu.vector_store %arg16[%c0_13, %c0_14], %14 {strides = array<i32>} : memref<16x16xf32, #tpu.memory_space<vmem>>, vector<16x16xf32>,
    } else {
    }
    %c0 = arith.constant 0 : index
    %c0_1 = arith.constant 0 : index
    %c0_2 = arith.constant 0 : index
    %3 = vector.load %arg4[%c0, %c0_1, %c0_2] : memref<1x16x16xf32, #tpu.memory_space<vmem>>, vector<1x16x16xf32>
    %4 = vector.shape_cast %3 : vector<1x16x16xf32> to vector<16x16xf32>
    %c0_3 = arith.constant 0 : index
    %c0_4 = arith.constant 0 : index
    %c0_5 = arith.constant 0 : index
    %5 = vector.load %arg5[%c0_3, %c0_4, %c0_5] : memref<1x16x16xf32, #tpu.memory_space<vmem>>, vector<1x16x16xf32>
    %6 = vector.shape_cast %5 : vector<1x16x16xf32> to vector<16x16xf32>
    %c0_6 = arith.constant 0 : index
    %c0_7 = arith.constant 0 : index
    %7 = vector.load %arg16[%c0_6, %c0_7] : memref<16x16xf32, #tpu.memory_space<vmem>>, vector<16x16xf32>
    %cst = arith.constant dense<0.000000e+00> : vector<16x16xf32>
    %8 = tpu.matmul %4, %6, %cst {dimension_numbers = #tpu.dot_dimension_numbers<[1], [0], [0], [1], [0, 0, 1, 1], [], []>} : vector<16x16xf32>, vector<16x16xf32>, vector<16x16xf32> -> vector<16x16xf32>
    %9 = arith.addf %7, %8 : vector<16x16xf32>
    %c0_8 = arith.constant 0 : index
    %c0_9 = arith.constant 0 : index
    %10 = vector.load %arg16[%c0_8, %c0_9] : memref<16x16xf32, #tpu.memory_space<vmem>>, vector<16x16xf32>
    tpu.vector_store %arg16[%c0_8, %c0_9], %9 {strides = array<i32>} : memref<16x16xf32, #tpu.memory_space<vmem>>, vector<16x16xf32>,
    %c0_i32_10 = arith.constant 0 : i32
    %11 = arith.cmpi eq, %arg2, %c0_i32_10 : i32
    %12 = arith.extui %11 : i1 to i32
    %c0_i32_11 = arith.constant 0 : i32
    %13 = arith.cmpi ne, %12, %c0_i32_11 : i32
    scf.if %13 {
      %c0_12 = arith.constant 0 : index
      %c0_13 = arith.constant 0 : index
      %14 = memref.load %arg3[%c0_12, %c0_13] : memref<1x1xf32, #tpu.memory_space<smem>>
      %c0_14 = arith.constant 0 : index
      %c0_15 = arith.constant 0 : index
      %15 = vector.load %arg16[%c0_14, %c0_15] : memref<16x16xf32, #tpu.memory_space<vmem>>, vector<16x16xf32>
      %c0_16 = arith.constant 0 : index
      %c0_17 = arith.constant 0 : index
      %c0_18 = arith.constant 0 : index
      %16 = vector.load %arg6[%c0_16, %c0_17, %c0_18] : memref<1x16x16xf32, #tpu.memory_space<vmem>>, vector<1x16x16xf32>
      %17 = vector.shape_cast %16 : vector<1x16x16xf32> to vector<16x16xf32>
      %18 = vector.broadcast %14 : f32 to vector<16x16xf32>
      %19 = arith.mulf %18, %17 : vector<16x16xf32>
      %20 = arith.addf %15, %19 : vector<16x16xf32>
      %c0_19 = arith.constant 0 : index
      %c0_20 = arith.constant 0 : index
      %21 = vector.load %arg7[%c0_19, %c0_20] : memref<16x32xf32, #tpu.memory_space<vmem>>, vector<16x32xf32>
      %cst_21 = arith.constant dense<0.000000e+00> : vector<16x32xf32>
      %22 = tpu.matmul %20, %21, %cst_21 {dimension_numbers = #tpu.dot_dimension_numbers<[1], [0], [0], [1], [0, 0, 1, 1], [], []>} : vector<16x16xf32>, vector<16x32xf32>, vector<16x32xf32> -> vector<16x32xf32>
      %c0_22 = arith.constant 0 : index
      %c0_23 = arith.constant 0 : index
      %23 = vector.load %arg8[%c0_22, %c0_23] : memref<1x32xf32, #tpu.memory_space<vmem>>, vector<1x32xf32>
      %24 = vector.broadcast %23 : vector<1x32xf32> to vector<16x32xf32>
      %25 = arith.addf %22, %24 : vector<16x32xf32>
      %c0_24 = arith.constant 0 : index
      %c0_25 = arith.constant 0 : index
      %26 = vector.load %arg9[%c0_24, %c0_25] : memref<1x32xf32, #tpu.memory_space<vmem>>, vector<1x32xf32>
      %c0_26 = arith.constant 0 : index
      %c0_27 = arith.constant 0 : index
      %27 = vector.load %arg10[%c0_26, %c0_27] : memref<1x32xf32, #tpu.memory_space<vmem>>, vector<1x32xf32>
      %cst_28 = arith.constant dense<0.000000e+00> : vector<16xf32>
      %28 = vector.multi_reduction <add>, %25, %cst_28 [1] : vector<16x32xf32> to vector<16xf32>
      %29 = vector.shape_cast %28 : vector<16xf32> to vector<16x1xf32>
      %cst_29 = arith.constant 3.200000e+01 : f32
      %30 = vector.broadcast %cst_29 : f32 to vector<16x1xf32>
      %31 = arith.divf %29, %30 : vector<16x1xf32>
      %32 = vector.broadcast %31 : vector<16x1xf32> to vector<16x32xf32>
      %33 = arith.subf %25, %32 : vector<16x32xf32>
      %34 = vector.broadcast %31 : vector<16x1xf32> to vector<16x32xf32>
      %35 = arith.subf %25, %34 : vector<16x32xf32>
      %36 = arith.mulf %33, %35 : vector<16x32xf32>
      %cst_30 = arith.constant dense<0.000000e+00> : vector<16xf32>
      %37 = vector.multi_reduction <add>, %36, %cst_30 [1] : vector<16x32xf32> to vector<16xf32>
      %38 = vector.shape_cast %37 : vector<16xf32> to vector<16x1xf32>
      %cst_31 = arith.constant 3.200000e+01 : f32
      %39 = vector.broadcast %cst_31 : f32 to vector<16x1xf32>
      %40 = arith.divf %38, %39 : vector<16x1xf32>
      %41 = vector.broadcast %31 : vector<16x1xf32> to vector<16x32xf32>
      %42 = arith.subf %25, %41 : vector<16x32xf32>
      %cst_32 = arith.constant 9.99999974E-6 : f32
      %43 = vector.broadcast %cst_32 : f32 to vector<16x1xf32>
      %44 = arith.addf %40, %43 : vector<16x1xf32>
      %45 = math.rsqrt %44 : vector<16x1xf32>
      %46 = vector.broadcast %45 : vector<16x1xf32> to vector<16x32xf32>
      %47 = arith.mulf %42, %46 : vector<16x32xf32>
      %48 = vector.broadcast %26 : vector<1x32xf32> to vector<16x32xf32>
      %49 = arith.mulf %47, %48 : vector<16x32xf32>
      %50 = vector.broadcast %27 : vector<1x32xf32> to vector<16x32xf32>
      %51 = arith.addf %49, %50 : vector<16x32xf32>
      %cst_33 = arith.constant 0.000000e+00 : f32
      %52 = vector.broadcast %cst_33 : f32 to vector<16x32xf32>
      %53 = arith.maximumf %51, %52 : vector<16x32xf32>
      %c0_34 = arith.constant 0 : index
      %c0_35 = arith.constant 0 : index
      %54 = vector.load %arg11[%c0_34, %c0_35] : memref<32x32xf32, #tpu.memory_space<vmem>>, vector<32x32xf32>
      %cst_36 = arith.constant dense<0.000000e+00> : vector<16x32xf32>
      %55 = tpu.matmul %53, %54, %cst_36 {dimension_numbers = #tpu.dot_dimension_numbers<[1], [0], [0], [1], [0, 0, 1, 1], [], []>} : vector<16x32xf32>, vector<32x32xf32>, vector<16x32xf32> -> vector<16x32xf32>
      %c0_37 = arith.constant 0 : index
      %c0_38 = arith.constant 0 : index
      %56 = vector.load %arg12[%c0_37, %c0_38] : memref<1x32xf32, #tpu.memory_space<vmem>>, vector<1x32xf32>
      %57 = vector.broadcast %56 : vector<1x32xf32> to vector<16x32xf32>
      %58 = arith.addf %55, %57 : vector<16x32xf32>
      %c0_39 = arith.constant 0 : index
      %c0_40 = arith.constant 0 : index
      %59 = vector.load %arg13[%c0_39, %c0_40] : memref<1x32xf32, #tpu.memory_space<vmem>>, vector<1x32xf32>
      %c0_41 = arith.constant 0 : index
      %c0_42 = arith.constant 0 : index
      %60 = vector.load %arg14[%c0_41, %c0_42] : memref<1x32xf32, #tpu.memory_space<vmem>>, vector<1x32xf32>
      %cst_43 = arith.constant dense<0.000000e+00> : vector<16xf32>
      %61 = vector.multi_reduction <add>, %58, %cst_43 [1] : vector<16x32xf32> to vector<16xf32>
      %62 = vector.shape_cast %61 : vector<16xf32> to vector<16x1xf32>
      %cst_44 = arith.constant 3.200000e+01 : f32
      %63 = vector.broadcast %cst_44 : f32 to vector<16x1xf32>
      %64 = arith.divf %62, %63 : vector<16x1xf32>
      %65 = vector.broadcast %64 : vector<16x1xf32> to vector<16x32xf32>
      %66 = arith.subf %58, %65 : vector<16x32xf32>
      %67 = vector.broadcast %64 : vector<16x1xf32> to vector<16x32xf32>
      %68 = arith.subf %58, %67 : vector<16x32xf32>
      %69 = arith.mulf %66, %68 : vector<16x32xf32>
      %cst_45 = arith.constant dense<0.000000e+00> : vector<16xf32>
      %70 = vector.multi_reduction <add>, %69, %cst_45 [1] : vector<16x32xf32> to vector<16xf32>
      %71 = vector.shape_cast %70 : vector<16xf32> to vector<16x1xf32>
      %cst_46 = arith.constant 3.200000e+01 : f32
      %72 = vector.broadcast %cst_46 : f32 to vector<16x1xf32>
      %73 = arith.divf %71, %72 : vector<16x1xf32>
      %74 = vector.broadcast %64 : vector<16x1xf32> to vector<16x32xf32>
      %75 = arith.subf %58, %74 : vector<16x32xf32>
      %cst_47 = arith.constant 9.99999974E-6 : f32
      %76 = vector.broadcast %cst_47 : f32 to vector<16x1xf32>
      %77 = arith.addf %73, %76 : vector<16x1xf32>
      %78 = math.rsqrt %77 : vector<16x1xf32>
      %79 = vector.broadcast %78 : vector<16x1xf32> to vector<16x32xf32>
      %80 = arith.mulf %75, %79 : vector<16x32xf32>
      %81 = vector.broadcast %59 : vector<1x32xf32> to vector<16x32xf32>
      %82 = arith.mulf %80, %81 : vector<16x32xf32>
      %83 = vector.broadcast %60 : vector<1x32xf32> to vector<16x32xf32>
      %84 = arith.addf %82, %83 : vector<16x32xf32>
      %cst_48 = arith.constant 0.000000e+00 : f32
      %85 = vector.broadcast %cst_48 : f32 to vector<16x32xf32>
      %86 = arith.maximumf %84, %85 : vector<16x32xf32>
      %c0_49 = arith.constant 0 : index
      %c0_50 = arith.constant 0 : index
      %c0_51 = arith.constant 0 : index
      %87 = vector.load %arg15[%c0_49, %c0_50, %c0_51] : memref<1x16x32xf32, #tpu.memory_space<vmem>>, vector<1x16x32xf32>
      %88 = vector.shape_cast %87 : vector<1x16x32xf32> to vector<16x32xf32>
      %89 = vector.shape_cast %86 : vector<16x32xf32> to vector<1x16x32xf32>
      tpu.vector_store %arg15[%c0_49, %c0_50, %c0_51], %89 {strides = array<i32>} : memref<1x16x32xf32, #tpu.memory_space<vmem>>, vector<1x16x32xf32>,
    } else {
    }
    return
  }
  func.func @transform_0(%arg0: i32, %arg1: i32, %arg2: i32) -> (i32, i32) {
    %c0_i32 = arith.constant 0 : i32
    %c0_i32_0 = arith.constant 0 : i32
    %c0_i32_1 = arith.constant 0 : i32
    return %c0_i32, %c0_i32_0 : i32, i32
  }
  func.func @transform_1(%arg0: i32, %arg1: i32, %arg2: i32) -> (i32, i32, i32) {
    %c0_i32 = arith.constant 0 : i32
    return %arg0, %arg1, %arg2 : i32, i32, i32
  }
  func.func @transform_2(%arg0: i32, %arg1: i32, %arg2: i32) -> (i32, i32, i32) {
    %c0_i32 = arith.constant 0 : i32
    %c0_i32_0 = arith.constant 0 : i32
    return %arg0, %arg2, %c0_i32 : i32, i32, i32
  }
  func.func @transform_3(%arg0: i32, %arg1: i32, %arg2: i32) -> (i32, i32, i32) {
    %c0_i32 = arith.constant 0 : i32
    %c0_i32_0 = arith.constant 0 : i32
    return %arg0, %arg1, %c0_i32 : i32, i32, i32
  }
  func.func @transform_4(%arg0: i32, %arg1: i32, %arg2: i32) -> (i32, i32) {
    %c0_i32 = arith.constant 0 : i32
    %c0_i32_0 = arith.constant 0 : i32
    %c0_i32_1 = arith.constant 0 : i32
    return %c0_i32, %c0_i32_0 : i32, i32
  }
  func.func @transform_5(%arg0: i32, %arg1: i32, %arg2: i32) -> (i32, i32) {
    %c0_i32 = arith.constant 0 : i32
    %c0_i32_0 = arith.constant 0 : i32
    %c0_i32_1 = arith.constant 0 : i32
    return %c0_i32, %c0_i32_0 : i32, i32
  }
  func.func @transform_6(%arg0: i32, %arg1: i32, %arg2: i32) -> (i32, i32) {
    %c0_i32 = arith.constant 0 : i32
    %c0_i32_0 = arith.constant 0 : i32
    %c0_i32_1 = arith.constant 0 : i32
    return %c0_i32, %c0_i32_0 : i32, i32
  }
  func.func @transform_7(%arg0: i32, %arg1: i32, %arg2: i32) -> (i32, i32) {
    %c0_i32 = arith.constant 0 : i32
    %c0_i32_0 = arith.constant 0 : i32
    %c0_i32_1 = arith.constant 0 : i32
    return %c0_i32, %c0_i32_0 : i32, i32
  }
  func.func @transform_8(%arg0: i32, %arg1: i32, %arg2: i32) -> (i32, i32) {
    %c0_i32 = arith.constant 0 : i32
    %c0_i32_0 = arith.constant 0 : i32
    %c0_i32_1 = arith.constant 0 : i32
    return %c0_i32, %c0_i32_0 : i32, i32
  }
  func.func @transform_9(%arg0: i32, %arg1: i32, %arg2: i32) -> (i32, i32) {
    %c0_i32 = arith.constant 0 : i32
    %c0_i32_0 = arith.constant 0 : i32
    %c0_i32_1 = arith.constant 0 : i32
    return %c0_i32, %c0_i32_0 : i32, i32
  }
  func.func @transform_10(%arg0: i32, %arg1: i32, %arg2: i32) -> (i32, i32) {
    %c0_i32 = arith.constant 0 : i32
    %c0_i32_0 = arith.constant 0 : i32
    %c0_i32_1 = arith.constant 0 : i32
    return %c0_i32, %c0_i32_0 : i32, i32
  }
  func.func @transform_11(%arg0: i32, %arg1: i32, %arg2: i32) -> (i32, i32) {
    %c0_i32 = arith.constant 0 : i32
    %c0_i32_0 = arith.constant 0 : i32
    %c0_i32_1 = arith.constant 0 : i32
    return %c0_i32, %c0_i32_0 : i32, i32
  }
  func.func @transform_12(%arg0: i32, %arg1: i32, %arg2: i32) -> (i32, i32, i32) {
    %c0_i32 = arith.constant 0 : i32
    %c0_i32_0 = arith.constant 0 : i32
    return %arg0, %arg1, %c0_i32 : i32, i32, i32
  }
}

</mosaic_0001>

<bundles_post_ra>
// kernel: tpu_custom_call.1
= control target key start
LH: loop header
LB: loop body
LE: loop exit
PB: predicated region body
PF: predicated region fallthrough
CT: control target
= control target key end

     0   :  { %18 = vsyncpa [#allocation5], 0  ;;  %s867_s0 = inlined_call_operand.<no memory space> [shape: f32[1,1], index: 0, kind: input, shape index: {}]   ;;  %s868_s1 = inlined_call_operand.hbm [shape: f32[1,16,16], index: 1, kind: input, shape index: {}]   ;;  %s869_s2 = inlined_call_operand.hbm [shape: f32[1,16,16], index: 2, kind: input, shape index: {}]   ;;  %s870_s3 = inlined_call_operand.hbm [shape: f32[1,16,16], index: 3, kind: input, shape index: {}]   ;;  %s871_s4 = inlined_call_operand.hbm [shape: f32[16,32], index: 4, kind: input, shape index: {}]   ;;  %s872_s5 = inlined_call_operand.vmem [shape: f32[1,32], index: 5, kind: input, shape index: {}]   ;;  %s873_s6 = inlined_call_operand.vmem [shape: f32[1,32], index: 6, kind: input, shape index: {}]   ;;  %s874_s7 = inlined_call_operand.vmem [shape: f32[1,32], index: 7, kind: input, shape index: {}]   ;;  %s875_s8 = inlined_call_operand.hbm [shape: f32[32,32], index: 8, kind: input, shape index: {}]   ;;  %s876_s9 = inlined_call_operand.vmem [shape: f32[1,32], index: 9, kind: input, shape index: {}]   ;;  %s877_s10 = inlined_call_operand.vmem [shape: f32[1,32], index: 10, kind: input, shape index: {}]   ;;  %s878_s11 = inlined_call_operand.vmem [shape: f32[1,32], index: 11, kind: input, shape index: {}]   ;;  %s879_s12 = inlined_call_operand.hbm [shape: f32[1,16,32], index: 12, kind: output, shape index: {}]  }
   0x1   :  { %19 = vsyncpa [#allocation8], 0 }
   0x2   :  { %20 = vsyncpa [#allocation11], 0 }
   0x3   :  { %21 = vsyncpa [#allocation6], 0  ;;  %s716_s21 = smov [#allocation7]   ;;  %s717_s23 = smov [#allocation10]  }
   0x4   :  { %s41_s22 = sshll.u32 %s716_s21, 4  ;;  %s65_s24 = sshll.u32 %s717_s23, 4  ;;  %s42_s22 = int_to_ptr.vmem [resolvable:$true] %s41_s22  ;;  %s66_s24 = int_to_ptr.vmem [resolvable:$true] %s65_s24 }
   0x5   :  { %s596_s25 = scalar_lea.vmem %s42_s22, 256  ;;  %p601_p1 = scmp.lt.s32.totalorder %s42_s22, %s42_s22 }
   0x6   :  { %p597_p0 = scmp.ne.s32.totalorder %s42_s22, %s596_s25  ;;  %p602_p2 = scmp.lt.s32.totalorder %s596_s25, %s596_s25 }
   0x8   :  { %p603_p3 = por %p602_p2, %p601_p1 }
   0xa   :  { %p604_p4 = pnand %p603_p3, %p597_p0 }
   0xc   :  { %607 = shalt.err (!%p604_p4)
}
   0xd   :  { %s718_s26 = smov 128   ;;  %s719_s27 = smov 8  }
   0xe   :  { %47 = dma.hbm_to_vmem [thread:$0]  %s869_s2, 256, %s42_s22, [#allocation8], %s718_s26, %s718_s26, %s719_s27  }
   0xf   :  { %s616_s30 = scalar_lea.vmem %s66_s24, 256  ;;  %p621_p6 = scmp.lt.s32.totalorder %s66_s24, %s66_s24 }
  0x10   :  { %p617_p5 = scmp.ne.s32.totalorder %s66_s24, %s616_s30  ;;  %p622_p7 = scmp.lt.s32.totalorder %s616_s30, %s616_s30 }
  0x12   :  { %p623_p8 = por %p622_p7, %p621_p6 }
  0x14   :  { %p624_p9 = pnand %p623_p8, %p617_p5 }
  0x16   :  { %627 = shalt.err (!%p624_p9)
}
  0x17   :  { %71 = dma.hbm_to_vmem [thread:$0]  %s871_s4, 256, %s66_s24, [#allocation11], %s718_s26, %s718_s26, %s719_s27  }
  0x18   :  { %s720_s15 = smov [#allocation4]   ;;  %s721_s17 = smov [#allocation9]  }
  0x19   :  { %s29_s16 = sshll.u32 %s720_s15, 4  ;;  %s53_s18 = sshll.u32 %s721_s17, 4  ;;  %s30_s16 = int_to_ptr.vmem [resolvable:$true] %s29_s16  ;;  %s54_s18 = int_to_ptr.vmem [resolvable:$true] %s53_s18 }
  0x1a   :  { %s636_s2 = scalar_lea.vmem %s30_s16, 256  ;;  %p641_p11 = scmp.lt.s32.totalorder %s30_s16, %s30_s16 }
  0x1b   :  { %p637_p10 = scmp.ne.s32.totalorder %s30_s16, %s636_s2  ;;  %p642_p12 = scmp.lt.s32.totalorder %s636_s2, %s636_s2 }
  0x1d   :  { %p643_p13 = por %p642_p12, %p641_p11 }
  0x1f   :  { %p644_p0 = pnand %p643_p13, %p637_p10 }
  0x21   :  { %647 = shalt.err (!%p644_p0)
}
  0x22   :  { %35 = dma.hbm_to_vmem [thread:$0]  %s868_s1, 256, %s30_s16, [#allocation5], %s718_s26, %s718_s26, %s719_s27  }
  0x23   :  { %s656_s4 = scalar_lea.vmem %s54_s18, 256  ;;  %p661_p2 = scmp.lt.s32.totalorder %s54_s18, %s54_s18 }
  0x24   :  { %p657_p1 = scmp.ne.s32.totalorder %s54_s18, %s656_s4  ;;  %p662_p3 = scmp.lt.s32.totalorder %s656_s4, %s656_s4 }
  0x26   :  { %p663_p4 = por %p662_p3, %p661_p2 }
  0x28   :  { %p664_p5 = pnand %p663_p4, %p657_p1 }
  0x2a   :  { %667 = shalt.err (!%p664_p5)
}
  0x2b   :  { %59 = dma.hbm_to_vmem [thread:$0]  %s870_s3, 256, %s54_s18, [#allocation8], %s718_s26, %s718_s26, %s719_s27  }
  0x2c   :  { %s722_s23 = smov [#allocation12]  }
  0x2d   :  { %s83_s24 = sshll.u32 %s722_s23, 4  ;;  %s84_s24 = int_to_ptr.vmem [resolvable:$true] %s83_s24 }
  0x2e   :  { %s676_s25 = scalar_lea.vmem %s84_s24, 512  ;;  %p681_p7 = scmp.lt.s32.totalorder %s84_s24, %s84_s24 }
  0x2f   :  { %p677_p6 = scmp.ne.s32.totalorder %s84_s24, %s676_s25  ;;  %p682_p8 = scmp.lt.s32.totalorder %s676_s25, %s676_s25 }
  0x31   :  { %p683_p9 = por %p682_p8, %p681_p7 }
  0x33   :  { %p684_p10 = pnand %p683_p9, %p677_p6 }
  0x35   :  { %687 = shalt.err (!%p684_p10)
}
  0x36   :  { %89 = dma.hbm_to_vmem [thread:$0]  %s875_s8, 512, %s84_s24, [#allocation11], %s718_s26, %s718_s26, %s719_s27  }
  0x37   :  { %708 = dma.done.wait [#allocation5], 256  }
  0x38   :  { %709 = vsyncadd [#allocation5], 4294967040 }
  0x39   :  { %710 = dma.done.wait [#allocation8], 512  }
  0x3a   :  { %711 = vsyncadd [#allocation8], 4294966784 }
  0x3b   :  { %712 = dma.done.wait [#allocation11], 768  }
  0x3c   :  { %713 = vsyncadd [#allocation11], 4294966528  ;;  %vm115_vm0 = vcmask 130048   ;;  %v723_v0 = vmov 0.0   ;;  %v121_v1 = vld [vmem:[#allocation7 + $0x8] sm:$0xff]  ;;  %v120_v2 = vld [vmem:[#allocation7] sm:$0xff]  ;;  %v218_v15 = vstv %s867_s0 }
  0x3d   :  { %117 = vst.msk [vmem:[#allocation2 + $0x8] sm:$0xff] %vm115_vm0, %v723_v0  ;;  %116 = vst.msk [vmem:[#allocation2] sm:$0xff] %vm115_vm0, %v723_v0  ;;  %v118_v3 = vld [vmem:[#allocation4] sm:$0xff]  ;;  %546 = vmatprep.subr.mxu1 %v121_v1  ;;  %v119_v4 = vld [vmem:[#allocation4 + $0x8] sm:$0xff]  ;;  %vm315_vm1 = vcmask 261120   ;;  %s724_s18 = smov [#allocation13]  }
  0x3e   :  { %550 = vmatprep.mubr.msk.f32.mxu1 %vm115_vm0, %v118_v3  ;;  %547 = vmatpush3.msra.mxu1 %v121_v1  ;;  %v224_v5 = vld [vmem:[#allocation10 + $0x8] sm:$0xff]  ;;  %v223_v6 = vld [vmem:[#allocation10] sm:$0xff]  ;;  %v216_v13 = vld [vmem:[#allocation9] sm:$0xff]  ;;  %s506_s2 = sshll.u32 %s724_s18, 4  ;;  %s507_s2 = int_to_ptr.vmem [resolvable:$true] %s506_s2 }
  0x3f   :  { %548 = vmatprep.subr.mxu1 %v120_v2  ;;  %v217_v14 = vld [vmem:[#allocation9 + $0x8] sm:$0xff]  ;;  %v219_v16 = vmul.f32 %v218_v15, %v216_v13  ;;  %v522_v23 = vld [vmem:[%s872_s5] ss:$0 sm:$0xff]  ;;  %v364_v39 = vld [vmem:[#allocation12 + $0x18] sm:$0xff]  ;;  %p693_p12 = scmp.lt.s32.totalorder %s507_s2, %s507_s2 }
  0x40   :  { %549 = vmatpush3.msra.mxu1 %v120_v2  ;;  %v220_v17 = vmul.f32 %v218_v15, %v217_v14  ;;  %v363_v40 = vld [vmem:[#allocation12 + $0x10] sm:$0xff]  ;;  %560 = vmatprep.subr.mxu0 %v364_v39  ;;  %v362_v41 = vld [vmem:[#allocation12 + $0x8] sm:$0xff]  ;;  %v361_v42 = vld [vmem:[#allocation12] sm:$0xff] }
  0x41   :  { %551 = vmatmul.mubr.msk.f32.vlgmr.msra.gmra.mxu1 %vm115_vm0, %v119_v4  ;;  %553 = vmatprep.subr.mxu1 %v224_v5  ;;  %v525_v50 = vld [vmem:[%s873_s6] ss:$0 sm:$0xff] }
  0x42   :  { %554 = vmatpush3.msra.mxu1 %v224_v5  ;;  %561 = vmatpush3.msra.mxu0 %v364_v39  ;;  %v526_v52 = vld [vmem:[%s874_s7] ss:$0 sm:$0xff] }
  0x43   :  { %555 = vmatprep.subr.mxu1 %v223_v6  ;;  %562 = vmatprep.subr.mxu0 %v363_v40  ;;  %v527_v61 = vld [vmem:[%s876_s9] ss:$0 sm:$0xff] }
  0x44   :  { %556 = vmatpush3.msra.mxu1 %v223_v6  ;;  %v123_v7 = vld [vmem:[#allocation2 + $0x8] sm:$0xff]  ;;  %v122_v9 = vld [vmem:[#allocation2] sm:$0xff]  ;;  %563 = vmatpush3.msra.mxu0 %v363_v40 }
  0x45   :  { %564 = vmatprep.subr.mxu0 %v362_v41 }
  0x46   :  { %565 = vmatpush3.msra.mxu0 %v362_v41 }
  0x47   :  { %566 = vmatprep.subr.mxu0 %v361_v42 }
  0x48   :  { %567 = vmatpush3.msra.mxu0 %v361_v42 }
 0x101   :  { %v552_v8 = vpop.f32.mrf.mxu1 }
 0x102   :  { %v207_v10 = vadd.f32 %v552_v8, %v123_v7 }
 0x103   :  { %v197_v11 = vpop.f32.mrf.mxu1 }
 0x104   :  { %209 = vst.msk [vmem:[#allocation2 + $0x8] sm:$0xff] %vm115_vm0, %v207_v10  ;;  %v206_v12 = vadd.f32 %v197_v11, %v122_v9 }
 0x106   :  { %208 = vst.msk [vmem:[#allocation2] sm:$0xff] %vm115_vm0, %v206_v12 }
 0x10b   :  { %v215_v18 = vld [vmem:[#allocation2 + $0x8] sm:$0xff] }
 0x10c   :  { %v222_v21 = vadd.f32 %v220_v17, %v215_v18 }
 0x10d   :  { %v214_v19 = vld [vmem:[#allocation2] sm:$0xff] }
 0x10e   :  { %v221_v20 = vadd.f32 %v219_v16, %v214_v19 }
 0x110   :  { %557 = vmatprep.mubr.msk.f32.mxu1 %vm115_vm0, %v221_v20 }
 0x111   :  { %558 = vmatmul.mubr.msk.f32.vlgmr.msra.gmra.mxu1 %vm115_vm0, %v222_v21  ;;  %v530_v21 = vld [vmem:[%s877_s10] ss:$0 sm:$0xff]  ;;  %s688_s10 = scalar_lea.vmem %s507_s2, 256 }
 0x112   :  { %p689_p11 = scmp.ne.s32.totalorder %s507_s2, %s688_s10  ;;  %p694_p13 = scmp.lt.s32.totalorder %s688_s10, %s688_s10 }
 0x114   :  { %p695_p0 = por %p694_p13, %p693_p12 }
 0x116   :  { %p696_p1 = pnand %p695_p0, %p689_p11 }
 0x1d1   :  { %v559_v22 = vpop.f32.mrf.mxu1 }
 0x1d2   :  { %v310_v26 = vadd.f32 %v559_v22, %v522_v23 }
 0x1d3   :  { %v304_v24 = vpop.f32.mrf.mxu1 }
 0x1d4   :  { %v305_v25 = vadd.f32 %v522_v23, %v304_v24  ;;  %v319_v28 = vsel %vm315_vm1, %v310_v26, 0.0  ;;  %v531_v24 = vld [vmem:[%s878_s11] ss:$0 sm:$0xff] }
 0x1d6   :  { %v316_v27 = vsel %vm315_vm1, %v305_v25, 0.0 }
 0x1d7   :  { %317 = vadd.xlane.f32.xlu0 %v316_v27 }
 0x1db   :  { %320 = vadd.xlane.f32.xlu0 %v319_v28 }
 0x260   :  { %v318_v29 = vpop.xlane.xlu0 %317 }
 0x261   :  { %v323_v30 = vmul.f32 0.03125, %v318_v29 }
 0x263   :  { %v325_v31 = vsub.f32 %v305_v25, %v323_v30 }
 0x264   :  { %v321_v32 = vpop.xlane.xlu0 %320 }
 0x265   :  { %v324_v33 = vmul.f32 0.03125, %v321_v32  ;;  %v327_v34 = vmul.f32 %v325_v31, %v325_v31 }
 0x267   :  { %v326_v35 = vsub.f32 %v310_v26, %v324_v33  ;;  %v329_v36 = vsel %vm315_vm1, %v327_v34, 0.0 }
 0x268   :  { %330 = vadd.xlane.f32.xlu1 %v329_v36 }
 0x269   :  { %v328_v37 = vmul.f32 %v326_v35, %v326_v35 }
 0x26b   :  { %v332_v38 = vsel %vm315_vm1, %v328_v37, 0.0 }
 0x26c   :  { %333 = vadd.xlane.f32.xlu1 %v332_v38 }
 0x2f1   :  { %v331_v43 = vpop.xlane.xlu1 %330 }
 0x2f2   :  { %v335_v44 = vmul.f32 0.03125, %v331_v43 }
 0x2f4   :  { %v337_v45 = vadd.f32 1e-05, %v335_v44 }
 0x2f5   :  { %v334_v46 = vpop.xlane.xlu1 %333 }
 0x2f6   :  { %580 = vrsqrt.f32 %v337_v45  ;;  %v336_v47 = vmul.f32 0.03125, %v334_v46 }
 0x2f8   :  { %v338_v48 = vadd.f32 1e-05, %v336_v47 }
 0x2fa   :  { %582 = vrsqrt.f32 %v338_v48 }
 0x303   :  { %v581_v49 = vpop.eup %580 }
 0x304   :  { %v341_v51 = vmul.f32 %v581_v49, %v325_v31 }
 0x306   :  { %v349_v53 = vmul.f32 %v525_v50, %v341_v51 }
 0x307   :  { %v583_v54 = vpop.eup %582 }
 0x308   :  { %v342_v55 = vmul.f32 %v583_v54, %v326_v35  ;;  %v357_v56 = vadd.f32 %v526_v52, %v349_v53 }
 0x30a   :  { %v350_v57 = vmul.f32 %v525_v50, %v342_v55  ;;  %v359_v58 = vmax.f32 %v357_v56, 0.0 }
 0x30c   :  { %v358_v59 = vadd.f32 %v526_v52, %v350_v57  ;;  %568 = vmatprep.mubr.msk.f32.mxu0 %vm315_vm1, %v359_v58 }
 0x30e   :  { %v360_v60 = vmax.f32 %v358_v59, 0.0 }
 0x310   :  { %569 = vmatmul.mubr.msk.f32.vlgmr.msra.gmra.mxu0 %vm315_vm1, %v360_v60 }
 0x3d0   :  { %v570_v62 = vpop.f32.mrf.mxu0 }
 0x3d1   :  { %v450_v63 = vadd.f32 %v570_v62, %v527_v61 }
 0x3d2   :  { %v444_v0 = vpop.f32.mrf.mxu0 }
 0x3d3   :  { %v445_v1 = vadd.f32 %v527_v61, %v444_v0  ;;  %v458_v2 = vsel %vm315_vm1, %v450_v63, 0.0 }
 0x3d4   :  { %459 = vadd.xlane.f32.xlu1 %v458_v2 }
 0x3d5   :  { %v455_v3 = vsel %vm315_vm1, %v445_v1, 0.0 }
 0x3d6   :  { %456 = vadd.xlane.f32.xlu0 %v455_v3 }
 0x45d   :  { %v460_v4 = vpop.xlane.xlu1 %459 }
 0x45e   :  { %v462_v5 = vmul.f32 0.03125, %v460_v4 }
 0x45f   :  { %v457_v6 = vpop.xlane.xlu0 %456 }
 0x460   :  { %v464_v7 = vsub.f32 %v450_v63, %v462_v5  ;;  %v461_v8 = vmul.f32 0.03125, %v457_v6 }
 0x462   :  { %v463_v9 = vsub.f32 %v445_v1, %v461_v8  ;;  %v466_v10 = vmul.f32 %v464_v7, %v464_v7 }
 0x464   :  { %v470_v11 = vsel %vm315_vm1, %v466_v10, 0.0  ;;  %v465_v12 = vmul.f32 %v463_v9, %v463_v9 }
 0x465   :  { %471 = vadd.xlane.f32.xlu1 %v470_v11 }
 0x466   :  { %v467_v13 = vsel %vm315_vm1, %v465_v12, 0.0 }
 0x467   :  { %468 = vadd.xlane.f32.xlu0 %v467_v13 }
 0x4ee   :  { %v472_v14 = vpop.xlane.xlu1 %471 }
 0x4ef   :  { %v474_v15 = vmul.f32 0.03125, %v472_v14 }
 0x4f0   :  { %v469_v16 = vpop.xlane.xlu0 %468 }
 0x4f1   :  { %v476_v17 = vadd.f32 1e-05, %v474_v15  ;;  %v473_v18 = vmul.f32 0.03125, %v469_v16 }
 0x4f3   :  { %584 = vrsqrt.f32 %v476_v17  ;;  %v475_v19 = vadd.f32 1e-05, %v473_v18 }
 0x4f5   :  { %586 = vrsqrt.f32 %v475_v19 }
 0x500   :  { %v585_v20 = vpop.eup %584 }
 0x501   :  { %v480_v22 = vmul.f32 %v585_v20, %v464_v7 }
 0x502   :  { %v587_v23 = vpop.eup %586 }
 0x503   :  { %v479_v25 = vmul.f32 %v587_v23, %v463_v9  ;;  %v488_v26 = vmul.f32 %v530_v21, %v480_v22 }
 0x505   :  { %v487_v27 = vmul.f32 %v530_v21, %v479_v25  ;;  %v496_v28 = vadd.f32 %v531_v24, %v488_v26 }
 0x507   :  { %v495_v29 = vadd.f32 %v531_v24, %v487_v27  ;;  %v498_v30 = vmax.f32 %v496_v28, 0.0 }
 0x509   :  { %v497_v31 = vmax.f32 %v495_v29, 0.0  ;;  %500 = vst.msk [vmem:[#allocation13 + $0x8] sm:$0xff] %vm315_vm1, %v498_v30 }
 0x50b   :  { %499 = vst.msk [vmem:[#allocation13] sm:$0xff] %vm315_vm1, %v497_v31 }
 0x50c   :  { %699 = shalt.err (!%p696_p1)
}
 0x50d   :  { %512 = dma.vmem_to_hbm [thread:$0]  %s507_s2, 256, %s879_s12, [#allocation6], %s718_s26, %s718_s26, %s719_s27  }
 0x50e   :  { %714 = dma.done.wait [#allocation6], 256  }
 0x50f   :  { %715 = vsyncadd [#allocation6], 4294967040 }
 0x510   :  { %516 = vsyncpa [#allocation5], 1 }
 0x511   :  { %517 = vsyncpa [#allocation8], 1 }
 0x512   :  { %518 = vsyncpa [#allocation11], 1 }
 0x513   :  { %519 = vsyncpa [#allocation6], 1 }

</bundles_post_ra>
